<compile_context>
chip_gen: v7x
topology: tpu7x:2x2x1
jax: 0.10.0
libtpu: 0.0.40
codegen_flags: <defaults>
</compile_context>

<pallas_src>
import jax
import jax.numpy as jnp
from jax.experimental import pallas as pl
from jax.experimental.pallas import tpu as pltpu


def shift_mapper_kernel(j_ref, ep_ref, z_ref, o_ref):
    """o = z * (endpoints[j+1] - endpoints[j]) + endpoints[j], elementwise."""
    j = j_ref[0]                       # scalar attribute index (SMEM prefetch)
    lo = ep_ref[j]                     # endpoints[j]
    scale = ep_ref[j + 1] - lo         # endpoints[j+1] - endpoints[j]
    # HBM-bound kernel: the f32 upcast is free VPU slack and keeps v5e happy
    # (no native bf16 VALU there).
    z = z_ref[...].astype(jnp.float32)
    o_ref[...] = (z * scale + lo).astype(o_ref.dtype)


def _round_up(x, m):
    return ((x + m - 1) // m) * m


def _default_block_bytes():
    """Per-generation target block size (bytes) for the streaming tile."""
    try:
        kind = jax.devices()[0].device_kind.lower()
    except Exception:
        kind = ""
    if "v7" in kind:
        return 8 << 20          # 3.2 TB/s HBM: amortize the ~0.35us step cost
    if "v5 lite" in kind or "v5e" in kind:
        return 2 << 20          # stay well inside v5e's 16 MiB scoped default
    return 4 << 20              # v6e / others


def _pick_cols(n, natural_d, itemsize, block_bytes):
    """Pick a lane width that gives a copy-free reshape of the flat latent.

    Returns None only when a pad+slice fallback is unavoidable.
    """
    max_cols = max(128, block_bytes // (8 * itemsize))
    # 1) the array's own trailing dim, if lane-aligned (pure leading-dim collapse)
    if natural_d is not None and natural_d % 128 == 0 and natural_d <= max_cols:
        return natural_d
    # 2) a lane-aligned divisor of the flat size (still a free reshape)
    for c in (4096, 3840, 2048, 1920, 1536, 1280, 1024, 768, 640, 512, 384, 256, 128):
        if c <= max_cols and n % c == 0:
            return c
    # 3) the trailing dim even if not lane-aligned: stores are masked but we
    #    avoid any pad/slice HBM passes.
    if natural_d is not None and natural_d <= max_cols:
        return natural_d
    # 4) small enough to process as a single (1, n) block
    if n * itemsize <= block_bytes:
        return n
    return None


def _pick_row_block(rows, cols, itemsize, sub, block_bytes, total_bytes):
    """Row tile: ~block_bytes per block, multiple of the sublane quantum, and
    at least 2 grid steps for large inputs (v7x megacore)."""
    tb = max(sub, (block_bytes // max(1, cols * itemsize)) // sub * sub)
    if total_bytes >= (2 << 20) and rows > sub:
        tb = min(tb, max(sub, _round_up(pl.cdiv(rows, 2), sub)))
    if tb >= rows:
        tb = rows               # full-extent block (always legal)
    return tb


def _shift_mapper_2d(z2d, ep, j_arr, tb):
    rows, cols = z2d.shape
    itemsize = jnp.dtype(z2d.dtype).itemsize
    grid = (pl.cdiv(rows, tb),)
    block_vmem = tb * cols * itemsize
    # in + out, double-buffered, plus slack; capped below v7x's 64 MiB physical.
    vmem_limit = int(min(48 << 20, max(32 << 20, 4 * block_vmem + (4 << 20))))
    return pl.pallas_call(
        shift_mapper_kernel,
        out_shape=jax.ShapeDtypeStruct((rows, cols), z2d.dtype),
        grid_spec=pltpu.PrefetchScalarGridSpec(
            num_scalar_prefetch=2,       # j, endpoints -> SMEM
            grid=grid,
            in_specs=[pl.BlockSpec((tb, cols), lambda i, j_ref, ep_ref: (i, 0))],
            out_specs=pl.BlockSpec((tb, cols), lambda i, j_ref, ep_ref: (i, 0)),
        ),
        compiler_params=pltpu.CompilerParams(
            dimension_semantics=("parallel",),
            vmem_limit_bytes=vmem_limit),
        cost_estimate=pl.CostEstimate(
            flops=2 * rows * cols,
            transcendentals=0,
            bytes_accessed=2 * rows * cols * itemsize),
    )(j_arr, ep, z2d)


def shift_mapper(z, endpoints, j, *, target_block_bytes=None):
    """Apply the ShiftMapper affine map to `z` (any shape, any float dtype)."""
    orig_shape = z.shape
    dtype = z.dtype
    itemsize = jnp.dtype(dtype).itemsize
    n = int(z.size)
    num_ep = int(endpoints.shape[0])

    if target_block_bytes is None:
        target_block_bytes = _default_block_bytes()

    # Packed dtypes (bf16 / fp8 / int8) need 16 / 32 sublanes per tile.
    sub = max(8, 32 // itemsize)

    # Clamp j so endpoints[j + 1] can never read out of SMEM bounds (TPU refs
    # have no runtime bounds checks).  PyTorch would raise instead.
    j_arr = jnp.clip(jnp.asarray(j, dtype=jnp.int32), 0, num_ep - 2).reshape(1)
    ep = endpoints.astype(jnp.float32)

    if n == 0:
        return z

    natural_d = int(orig_shape[-1]) if z.ndim >= 2 else None
    cols = _pick_cols(n, natural_d, itemsize, target_block_bytes)

    if cols is not None:
        rows = n // cols                       # exact by construction
        z2d = z.reshape(rows, cols)            # free: contiguous reshape
        tb = _pick_row_block(rows, cols, itemsize, sub,
                             target_block_bytes, n * itemsize)
        out2d = _shift_mapper_2d(z2d, ep, j_arr, tb)
        return out2d.reshape(orig_shape)

    # Last resort (huge ragged 1-D input): pad to a lane-aligned slab.
    # TODO(synk): this path pays ~3x HBM traffic (pad + slice); unreachable for
    # ordinary latent shapes.
    cols = 512
    rows = pl.cdiv(n, cols)
    zf = jnp.pad(z.reshape(-1), (0, rows * cols - n)).reshape(rows, cols)
    tb = _pick_row_block(rows, cols, itemsize, sub,
                         target_block_bytes, n * itemsize)
    out2d = _shift_mapper_2d(zf, ep, j_arr, tb)
    return out2d.reshape(-1)[:n].reshape(orig_shape)


if __name__ == "__main__":
    num_attributes = 4
    key = jax.random.PRNGKey(0)
    k_ep, k_z = jax.random.split(key)
    # deterministic "parameter" init, matching torch.randn(num_attributes + 1)
    endpoints = jax.random.normal(k_ep, (num_attributes + 1,), dtype=jnp.float32)

    # 1) Lane-aligned latents (free reshape, single block, unmasked stores).
    B, D = 16, 128
    j = 2
    z = jax.random.normal(k_z, (B, D), dtype=jnp.float32)
    out = jax.block_until_ready(shift_mapper(z, endpoints, j))
    ref = z * (endpoints[j + 1] - endpoints[j]) + endpoints[j]
    assert out.shape == ref.shape and out.dtype == ref.dtype
    assert jnp.allclose(out, ref, atol=1e-6, rtol=1e-6)

    # 2) Ragged trailing dim + bf16: full-extent lane block, no pad/slice copies.
    z2 = jax.random.normal(jax.random.PRNGKey(1), (10, 96),
                           dtype=jnp.float32).astype(jnp.bfloat16)
    out2 = jax.block_until_ready(shift_mapper(z2, endpoints, 3))
    ref2 = z2.astype(jnp.float32) * (endpoints[4] - endpoints[3]) + endpoints[3]
    assert out2.shape == z2.shape and out2.dtype == jnp.bfloat16
    assert jnp.allclose(out2.astype(jnp.float32), ref2, atol=3e-2, rtol=3e-2)

    # 3) Row count not a multiple of the row tile: exercises Pallas's
    #    partial-last-block handling (grid of 4, last block has 4 valid rows).
    z3 = jax.random.normal(jax.random.PRNGKey(2), (100, 128), dtype=jnp.float32)
    out3 = jax.block_until_ready(
        shift_mapper(z3, endpoints, 0, target_block_bytes=16 * 1024))
    ref3 = z3 * (endpoints[1] - endpoints[0]) + endpoints[0]
    assert jnp.allclose(out3, ref3, atol=1e-6, rtol=1e-6)

    print("KERNEL_OK")
</pallas_src>

<mosaic_0001>
module attributes {stable_mosaic.version = 11 : i64} {
  func.func @shift_mapper_kernel(%arg0: i32, %arg1: memref<1xi32, #tpu.memory_space<smem>>, %arg2: memref<5xf32, #tpu.memory_space<smem>>, %arg3: memref<16x128xf32, #tpu.memory_space<vmem>>, %arg4: memref<16x128xf32, #tpu.memory_space<vmem>>) attributes {dimension_semantics = [#tpu.dimension_semantics<parallel>], iteration_bounds = array<i64: 1>, scalar_prefetch = 2 : i64, scratch_operands = 0 : i64, tpu.core_type = #tpu.core_type<tc>, window_params = [{transform_indices = @transform_0, window_bounds = array<i64: 16, 128>}, {transform_indices = @transform_1, window_bounds = array<i64: 16, 128>}]} {
    %c0 = arith.constant 0 : index
    %0 = memref.load %arg1[%c0] : memref<1xi32, #tpu.memory_space<smem>>
    %1 = arith.index_cast %0 : i32 to index
    %2 = memref.load %arg2[%1] : memref<5xf32, #tpu.memory_space<smem>>
    %c1_i32 = arith.constant 1 : i32
    %3 = arith.addi %0, %c1_i32 : i32
    %4 = arith.index_cast %3 : i32 to index
    %5 = memref.load %arg2[%4] : memref<5xf32, #tpu.memory_space<smem>>
    %6 = arith.subf %5, %2 : f32
    %c0_0 = arith.constant 0 : index
    %c0_1 = arith.constant 0 : index
    %7 = vector.load %arg3[%c0_0, %c0_1] : memref<16x128xf32, #tpu.memory_space<vmem>>, vector<16x128xf32>
    %8 = vector.broadcast %6 : f32 to vector<16x128xf32>
    %9 = arith.mulf %7, %8 : vector<16x128xf32>
    %10 = vector.broadcast %2 : f32 to vector<16x128xf32>
    %11 = arith.addf %9, %10 : vector<16x128xf32>
    %c0_2 = arith.constant 0 : index
    %c0_3 = arith.constant 0 : index
    %12 = vector.load %arg4[%c0_2, %c0_3] : memref<16x128xf32, #tpu.memory_space<vmem>>, vector<16x128xf32>
    tpu.vector_store %arg4[%c0_2, %c0_3], %11 {strides = array<i32>} : memref<16x128xf32, #tpu.memory_space<vmem>>, vector<16x128xf32>,
    return
  }
  func.func @transform_0(%arg0: i32, %arg1: memref<1xi32, #tpu.memory_space<smem>>, %arg2: memref<5xf32, #tpu.memory_space<smem>>) -> (i32, i32) {
    %c0_i32 = arith.constant 0 : i32
    %c0_i32_0 = arith.constant 0 : i32
    return %arg0, %c0_i32 : i32, i32
  }
  func.func @transform_1(%arg0: i32, %arg1: memref<1xi32, #tpu.memory_space<smem>>, %arg2: memref<5xf32, #tpu.memory_space<smem>>) -> (i32, i32) {
    %c0_i32 = arith.constant 0 : i32
    %c0_i32_0 = arith.constant 0 : i32
    return %arg0, %c0_i32 : i32, i32
  }
}

</mosaic_0001>

<bundles_post_ra>
// kernel: tpu_custom_call.1
= control target key start
LH: loop header
LB: loop body
LE: loop exit
PB: predicated region body
PF: predicated region fallthrough
CT: control target
= control target key end

     0   :  { %s195_s0 = inlined_call_operand.<no memory space> [shape: s32[1], index: 0, kind: input, shape index: {}]   ;;  %s196_s1 = inlined_call_operand.vmem [shape: f32[5], index: 1, kind: input, shape index: {}]   ;;  %s197_s2 = inlined_call_operand.hbm [shape: f32[16,128], index: 2, kind: input, shape index: {}]   ;;  %s198_s3 = inlined_call_operand.hbm [shape: f32[16,128], index: 3, kind: output, shape index: {}]  }
   0x1   :  { %s9_s14 = sshll.u32 %s196_s1, 4  ;;  %s10_s14 = int_to_ptr.vmem [resolvable:$true] %s9_s14 }
   0x2   :  { %s69_s15 = scalar_lea.vmem %s10_s14, 16  ;;  %p74_p1 = scmp.lt.s32.totalorder %s10_s14, %s10_s14 }
   0x3   :  { %p70_p0 = scmp.ne.s32.totalorder %s10_s14, %s69_s15  ;;  %p75_p2 = scmp.lt.s32.totalorder %s69_s15, %s69_s15 }
   0x5   :  { %p76_p3 = por %p75_p2, %p74_p1 }
   0x7   :  { %p77_p4 = pnand %p76_p3, %p70_p0 }
   0x9   :  { %80 = shalt.err (!%p77_p4)  }
   0xa   :  { %s131_s16 = smov [#allocation4]  }
   0xb   :  { %12 = dma.vmem_to_smem %s10_s14, 16, %s131_s16, [#allocation2] }
   0xc   :  { %125 = dma.done.wait [#allocation2], 16 }
   0xd   :  { %126 = vsyncadd [#allocation2], 4294967280 }
   0xe   :  { %14 = sfence }
   0xf   :  { %15 = vsyncpa [#allocation6], 0 }
  0x10   :  { %16 = vsyncpa [#allocation7], 0  ;;  %s132_s17 = smov [#allocation5]   ;;  %s81_s20 = scalar_lea.hbm %s197_s2, 256 }
  0x11   :  { %s22_s18 = sshll.u32 %s132_s17, 4  ;;  %p82_p5 = scmp.ne.s32.totalorder %s197_s2, %s81_s20  ;;  %s23_s18 = int_to_ptr.vmem [resolvable:$true] %s22_s18 }
  0x12   :  { %p85_p6 = scmp.lt.u32.totalorder %s81_s20, %s197_s2 }
  0x14   :  { %p87_p7 = pnand %p85_p6, %p82_p5 }
  0x16   :  { %90 = shalt.err (!%p87_p7)
}
  0x17   :  { %s91_s25 = scalar_lea.vmem %s23_s18, 256  ;;  %p96_p9 = scmp.lt.s32.totalorder %s23_s18, %s23_s18 }
  0x18   :  { %p92_p8 = scmp.ne.s32.totalorder %s23_s18, %s91_s25  ;;  %p97_p10 = scmp.lt.s32.totalorder %s91_s25, %s91_s25 }
  0x1a   :  { %p98_p11 = por %p97_p10, %p96_p9 }
  0x1c   :  { %p99_p12 = pnand %p98_p11, %p92_p8 }
  0x1e   :  { %102 = shalt.err (!%p99_p12)
}
  0x1f   :  { %s133_s26 = smov 128   ;;  %s134_s27 = smov 8  }
  0x20   :  { %28 = dma.hbm_to_vmem [thread:$0]  %s197_s2, 256, %s23_s18, [#allocation6], %s133_s26, %s133_s26, %s134_s27  }
  0x21   :  { %127 = dma.done.wait [#allocation6], 256  }
  0x22   :  { %128 = vsyncadd [#allocation6], 4294967040  ;;  %s34_s5 = sadd.s32 1, %s195_s0  ;;  %s33_s8 = sld [smem:[#allocation4 + %s195_s0]]  ;;  %v37_v0 = vld [vmem:[#allocation5] sm:$0xff]  ;;  %v38_v1 = vld [vmem:[#allocation5 + $0x8] sm:$0xff] }
  0x23   :  { %s35_s9 = sld [smem:[#allocation4 + %s34_s5]]  ;;  %s135_s11 = smov [#allocation8]  }
  0x24   :  { %s52_s12 = sshll.u32 %s135_s11, 4  ;;  %s53_s12 = int_to_ptr.vmem [resolvable:$true] %s52_s12 }
  0x25   :  { %s103_s2 = scalar_lea.vmem %s53_s12, 256  ;;  %p108_p0 = scmp.lt.s32.totalorder %s53_s12, %s53_s12 }
  0x26   :  { %p104_p13 = scmp.ne.s32.totalorder %s53_s12, %s103_s2  ;;  %p109_p1 = scmp.lt.s32.totalorder %s103_s2, %s103_s2 }
  0x28   :  { %v42_v3 = vstv %s33_s8  ;;  %p110_p2 = por %p109_p1, %p108_p0 }
  0x29   :  { %s36_s10 = ssub.f32 %s35_s9, %s33_s8 }
  0x2a   :  { %p111_p3 = pnand %p110_p2, %p104_p13 }
  0x2b   :  { %v39_v2 = vstv %s36_s10 }
  0x2c   :  { %v40_v4 = vmul.f32 %v39_v2, %v37_v0  ;;  %v41_v5 = vmul.f32 %v39_v2, %v38_v1 }
  0x2e   :  { %v43_v6 = vadd.f32 %v42_v3, %v40_v4  ;;  %v44_v7 = vadd.f32 %v42_v3, %v41_v5 }
  0x30   :  { %45 = vst [vmem:[#allocation8] sm:$0xff] %v43_v6  ;;  %46 = vst [vmem:[#allocation8 + $0x8] sm:$0xff] %v44_v7 }
  0x31   :  { %114 = shalt.err (!%p111_p3)
}
  0x32   :  { %s115_s14 = scalar_lea.hbm %s198_s3, 256 }
  0x33   :  { %p116_p4 = scmp.ne.s32.totalorder %s198_s3, %s115_s14  ;;  %p119_p5 = scmp.lt.u32.totalorder %s115_s14, %s198_s3 }
  0x35   :  { %p121_p6 = pnand %p119_p5, %p116_p4 }
  0x37   :  { %124 = shalt.err (!%p121_p6)
}
  0x38   :  { %58 = dma.vmem_to_hbm [thread:$0]  %s53_s12, 256, %s198_s3, [#allocation7], %s133_s26, %s133_s26, %s134_s27  }
  0x39   :  { %129 = dma.done.wait [#allocation7], 256  }
  0x3a   :  { %130 = vsyncadd [#allocation7], 4294967040 }
  0x3b   :  { %62 = vsyncpa [#allocation6], 1 }
  0x3c   :  { %63 = vsyncpa [#allocation7], 1 }

</bundles_post_ra>
